<compile_context>
chip_gen: v7x
topology: tpu7x:2x2x1
jax: 0.10.0
libtpu: 0.0.40
codegen_flags: <defaults>
</compile_context>

<pallas_src>
import functools

import jax
import jax.numpy as jnp
from jax import lax
from jax.experimental import pallas as pl
from jax.experimental.pallas import tpu as pltpu

_LANES = 128                # lane (fast) axis width
_SUBLANES = 8               # f32 sublane granularity
_MAX_ROWS_PER_STEP = 2048   # (2048,128) f32 = 1 MiB/input block; 3 in x 2 bufs = 6 MiB


def _round_up(x, m):
    return ((x + m - 1) // m) * m


def _uncertainty_loss_kernel(pred_ref, targ_ref, unc_ref, out_ref, acc_ref,
                             *, beta, base_loss, rows, tm):
    i = pl.program_id(0)

    @pl.when(i == 0)
    def _():
        acc_ref[...] = jnp.zeros_like(acc_ref)

    # Native-dtype loads; upcast per tile (accumulation stays f32).
    p = pred_ref[...].astype(jnp.float32)
    t = targ_ref[...].astype(jnp.float32)
    u = unc_ref[...].astype(jnp.float32)

    u_clamped = jnp.maximum(u, jnp.float32(1e-6))
    log_var = jnp.log(u_clamped)
    diff = p - t
    if base_loss == "mse":
        base = diff * diff
    else:  # 'mae'
        base = jnp.abs(diff)
    # exp(-log(clamp(u))) == 1 / clamp(u): single EUP reciprocal.
    precision = pl.reciprocal(u_clamped, approx=True)
    weighted = precision * base + jnp.float32(beta) * log_var

    if rows % tm != 0:
        # Ragged tail: the last block reaches past the logical row extent and
        # contains garbage there.  Zero ALL terms (incl. beta*log_var) for
        # out-of-bounds rows.  jnp.where does not propagate NaN/Inf from the
        # unselected branch, so garbage bits are harmless.
        row_idx = lax.broadcasted_iota(jnp.int32, (tm, _LANES), 0)
        global_row = i * tm + row_idx
        weighted = jnp.where(global_row < rows, weighted, jnp.float32(0.0))

    # Fold the (tm,128) tile into the small (8,128) accumulator with pure
    # VALU adds (sublane-split reshape is layout-free for f32).
    acc_ref[...] += weighted.reshape(tm // _SUBLANES, _SUBLANES, _LANES).sum(axis=0)

    @pl.when(i == pl.num_programs(0) - 1)
    def _():
        # Single cross-lane/sublane reduce, once per kernel.
        out_ref[...] = jnp.broadcast_to(jnp.sum(acc_ref[...]),
                                        (_SUBLANES, _LANES))


def uncertainty_aware_loss(predictions, targets, uncertainty,
                           base_loss="mse", beta=0.1, reduction="mean"):
    assert base_loss in ("mse", "mae")
    assert reduction in ("mean", "sum")  # TODO(synk): reduction='none'
    assert predictions.shape == targets.shape == uncertainty.shape

    dtype = predictions.dtype
    if targets.dtype != dtype:
        targets = targets.astype(dtype)
    if uncertainty.dtype != dtype:
        uncertainty = uncertainty.astype(dtype)

    n_elements = predictions.size
    p = predictions.reshape(-1)
    t = targets.reshape(-1)
    u = uncertainty.reshape(-1)

    # Pad only when the flat length is not a multiple of the 128-lane width;
    # this is the only case that costs an HBM copy.  Pad values contribute
    # exactly zero (base = 0 and log_var = log(1) = 0).
    rem = n_elements % _LANES
    if rem:
        pad = _LANES - rem
        p = jnp.concatenate([p, jnp.zeros((pad,), dtype)])
        t = jnp.concatenate([t, jnp.zeros((pad,), dtype)])
        u = jnp.concatenate([u, jnp.ones((pad,), dtype)])
    rows = p.size // _LANES

    itemsize = jnp.dtype(dtype).itemsize
    # Sublane granularity: 8 for 4-byte dtypes, 16 for bf16/f16, 32 for 1-byte.
    sub_mult = max(_SUBLANES, 32 // itemsize)
    tm = min(_round_up(_MAX_ROWS_PER_STEP, sub_mult),
             _round_up(rows, sub_mult))
    steps = pl.cdiv(rows, tm)

    p = p.reshape(rows, _LANES)
    t = t.reshape(rows, _LANES)
    u = u.reshape(rows, _LANES)

    kernel = functools.partial(_uncertainty_loss_kernel, beta=beta,
                               base_loss=base_loss, rows=rows, tm=tm)

    in_blk = pl.BlockSpec((tm, _LANES), lambda i: (i, 0))
    out_blk = pl.BlockSpec((_SUBLANES, _LANES), lambda i: (0, 0))

    out = pl.pallas_call(
        kernel,
        out_shape=jax.ShapeDtypeStruct((_SUBLANES, _LANES), jnp.float32),
        grid_spec=pltpu.PrefetchScalarGridSpec(
            num_scalar_prefetch=0,
            grid=(steps,),
            in_specs=[in_blk, in_blk, in_blk],
            out_specs=out_blk,
            scratch_shapes=[pltpu.VMEM((_SUBLANES, _LANES), jnp.float32)],
        ),
        compiler_params=pltpu.CompilerParams(
            dimension_semantics=("arbitrary",),
        ),
        cost_estimate=pl.CostEstimate(
            flops=8 * rows * _LANES,
            transcendentals=2 * rows * _LANES,
            bytes_accessed=3 * rows * _LANES * itemsize + _SUBLANES * _LANES * 4,
        ),
    )(p, t, u)

    total = out[0, 0]
    if reduction == "mean":
        return total / jnp.float32(n_elements)
    return total


def _reference(predictions, targets, uncertainty, base_loss="mse", beta=0.1,
               reduction="mean"):
    predictions = predictions.astype(jnp.float32)
    targets = targets.astype(jnp.float32)
    uncertainty = uncertainty.astype(jnp.float32)
    log_var = jnp.log(jnp.clip(uncertainty, 1e-6, None))
    diff = predictions - targets
    base = diff * diff if base_loss == "mse" else jnp.abs(diff)
    precision = jnp.exp(-log_var)
    weighted = precision * base + beta * log_var
    return weighted.mean() if reduction == "mean" else weighted.sum()


if __name__ == "__main__":
    key = jax.random.PRNGKey(0)
    k1, k2, k3 = jax.random.split(key, 3)

    # 1) Default config: mse / beta=0.1 / mean  (batch=8, features=128).
    B, F = 8, 128
    predictions = jax.random.normal(k1, (B, F), dtype=jnp.float32)
    targets = jax.random.normal(k2, (B, F), dtype=jnp.float32)
    uncertainty = jax.nn.softplus(
        jax.random.normal(k3, (B, F), dtype=jnp.float32)) * 0.5

    loss = jax.block_until_ready(
        uncertainty_aware_loss(predictions, targets, uncertainty))
    ref = _reference(predictions, targets, uncertainty)
    assert jnp.allclose(loss, ref, rtol=2e-3, atol=2e-3), (loss, ref)

    # 2) mae / sum with a non-multiple-of-128 flat size (exercises the
    #    minimal 128-pad path plus in-kernel ragged-row masking).
    B2, F2 = 16, 100
    p2 = jax.random.normal(k1, (B2, F2), dtype=jnp.float32)
    t2 = jax.random.normal(k2, (B2, F2), dtype=jnp.float32)
    u2 = jax.nn.softplus(jax.random.normal(k3, (B2, F2), dtype=jnp.float32)) * 0.5
    loss2 = jax.block_until_ready(
        uncertainty_aware_loss(p2, t2, u2, base_loss="mae", beta=0.05,
                               reduction="sum"))
    ref2 = _reference(p2, t2, u2, base_loss="mae", beta=0.05, reduction="sum")
    assert jnp.allclose(loss2, ref2, rtol=2e-3, atol=2e-3), (loss2, ref2)

    # 3) Multi-step grid with a ragged last tile (rows=2560 > tm=2048),
    #    no wrapper-side padding/copies (flat size divisible by 128).
    B3, F3 = 640, 512
    p3 = jax.random.normal(k1, (B3, F3), dtype=jnp.float32)
    t3 = jax.random.normal(k2, (B3, F3), dtype=jnp.float32)
    u3 = jax.nn.softplus(jax.random.normal(k3, (B3, F3), dtype=jnp.float32)) * 0.5
    loss3 = jax.block_until_ready(uncertainty_aware_loss(p3, t3, u3))
    ref3 = _reference(p3, t3, u3)
    assert jnp.allclose(loss3, ref3, rtol=2e-3, atol=2e-3), (loss3, ref3)

    # 4) Native bf16 inputs (no wrapper upcast; per-tile upcast in kernel).
    B4, F4 = 64, 256
    p4 = jax.random.normal(k1, (B4, F4), dtype=jnp.float32).astype(jnp.bfloat16)
    t4 = jax.random.normal(k2, (B4, F4), dtype=jnp.float32).astype(jnp.bfloat16)
    u4 = (jax.nn.softplus(jax.random.normal(k3, (B4, F4), dtype=jnp.float32))
          * 0.5).astype(jnp.bfloat16)
    loss4 = jax.block_until_ready(uncertainty_aware_loss(p4, t4, u4))
    ref4 = _reference(p4, t4, u4)
    assert jnp.allclose(loss4, ref4, rtol=2e-3, atol=2e-3), (loss4, ref4)

    print("KERNEL_OK")
</pallas_src>

<mosaic_0001>
module attributes {stable_mosaic.version = 11 : i64} {
  func.func @_uncertainty_loss_kernel(%arg0: i32, %arg1: memref<8x128xf32, #tpu.memory_space<vmem>>, %arg2: memref<8x128xf32, #tpu.memory_space<vmem>>, %arg3: memref<8x128xf32, #tpu.memory_space<vmem>>, %arg4: memref<8x128xf32, #tpu.memory_space<vmem>>, %arg5: memref<8x128xf32, #tpu.memory_space<vmem>>) attributes {dimension_semantics = [#tpu.dimension_semantics<arbitrary>], iteration_bounds = array<i64: 1>, scalar_prefetch = 0 : i64, scratch_operands = 1 : i64, tpu.core_type = #tpu.core_type<tc>, window_params = [{transform_indices = @transform_0, window_bounds = array<i64: 8, 128>}, {transform_indices = @transform_1, window_bounds = array<i64: 8, 128>}, {transform_indices = @transform_2, window_bounds = array<i64: 8, 128>}, {pipeline_mode = #tpu.pipeline_mode<synchronous>, transform_indices = @transform_3, window_bounds = array<i64: 8, 128>}]} {
    %c0_i32 = arith.constant 0 : i32
    %0 = arith.cmpi eq, %arg0, %c0_i32 : i32
    %1 = arith.extui %0 : i1 to i32
    %c0_i32_0 = arith.constant 0 : i32
    %2 = arith.cmpi ne, %1, %c0_i32_0 : i32
    scf.if %2 {
      %cst_14 = arith.constant 0.000000e+00 : f32
      %24 = vector.broadcast %cst_14 : f32 to vector<8x128xf32>
      %c0_15 = arith.constant 0 : index
      %c0_16 = arith.constant 0 : index
      %25 = vector.load %arg5[%c0_15, %c0_16] : memref<8x128xf32, #tpu.memory_space<vmem>>, vector<8x128xf32>
      tpu.vector_store %arg5[%c0_15, %c0_16], %24 {strides = array<i32>} : memref<8x128xf32, #tpu.memory_space<vmem>>, vector<8x128xf32>,
    } else {
    }
    %c0 = arith.constant 0 : index
    %c0_1 = arith.constant 0 : index
    %3 = vector.load %arg1[%c0, %c0_1] : memref<8x128xf32, #tpu.memory_space<vmem>>, vector<8x128xf32>
    %c0_2 = arith.constant 0 : index
    %c0_3 = arith.constant 0 : index
    %4 = vector.load %arg2[%c0_2, %c0_3] : memref<8x128xf32, #tpu.memory_space<vmem>>, vector<8x128xf32>
    %c0_4 = arith.constant 0 : index
    %c0_5 = arith.constant 0 : index
    %5 = vector.load %arg3[%c0_4, %c0_5] : memref<8x128xf32, #tpu.memory_space<vmem>>, vector<8x128xf32>
    %cst = arith.constant 9.99999997E-7 : f32
    %6 = vector.broadcast %cst : f32 to vector<8x128xf32>
    %7 = arith.maximumf %5, %6 : vector<8x128xf32>
    %8 = math.log %7 : vector<8x128xf32>
    %9 = arith.subf %3, %4 : vector<8x128xf32>
    %10 = arith.mulf %9, %9 : vector<8x128xf32>
    %11 = tpu.reciprocal %7 {approx = true} : vector<8x128xf32> -> vector<8x128xf32>
    %12 = arith.mulf %11, %10 : vector<8x128xf32>
    %cst_6 = arith.constant 1.000000e-01 : f32
    %13 = vector.broadcast %cst_6 : f32 to vector<8x128xf32>
    %14 = arith.mulf %13, %8 : vector<8x128xf32>
    %15 = arith.addf %12, %14 : vector<8x128xf32>
    %c0_7 = arith.constant 0 : index
    %c0_8 = arith.constant 0 : index
    %16 = vector.load %arg5[%c0_7, %c0_8] : memref<8x128xf32, #tpu.memory_space<vmem>>, vector<8x128xf32>
    %17 = vector.shape_cast %15 : vector<8x128xf32> to vector<1x8x128xf32>
    %cst_9 = arith.constant dense<0.000000e+00> : vector<8x128xf32>
    %18 = vector.multi_reduction <add>, %17, %cst_9 [0] : vector<1x8x128xf32> to vector<8x128xf32>
    %19 = arith.addf %16, %18 : vector<8x128xf32>
    %c0_10 = arith.constant 0 : index
    %c0_11 = arith.constant 0 : index
    %20 = vector.load %arg5[%c0_10, %c0_11] : memref<8x128xf32, #tpu.memory_space<vmem>>, vector<8x128xf32>
    tpu.vector_store %arg5[%c0_10, %c0_11], %19 {strides = array<i32>} : memref<8x128xf32, #tpu.memory_space<vmem>>, vector<8x128xf32>,
    %c0_i32_12 = arith.constant 0 : i32
    %21 = arith.cmpi eq, %arg0, %c0_i32_12 : i32
    %22 = arith.extui %21 : i1 to i32
    %c0_i32_13 = arith.constant 0 : i32
    %23 = arith.cmpi ne, %22, %c0_i32_13 : i32
    scf.if %23 {
      %c0_14 = arith.constant 0 : index
      %c0_15 = arith.constant 0 : index
      %24 = vector.load %arg5[%c0_14, %c0_15] : memref<8x128xf32, #tpu.memory_space<vmem>>, vector<8x128xf32>
      %25 = vector.shape_cast %24 : vector<8x128xf32> to vector<1x8x128xf32>
      %cst_16 = arith.constant dense<0.000000e+00> : vector<1xf32>
      %26 = vector.multi_reduction <add>, %25, %cst_16 [1, 2] : vector<1x8x128xf32> to vector<1xf32>
      %27 = vector.shape_cast %26 : vector<1xf32> to vector<1x1x1xf32>
      %28 = vector.extract %27[0, 0, 0] : f32 from vector<1x1x1xf32>
      %29 = vector.broadcast %28 : f32 to vector<8x128xf32>
      %c0_17 = arith.constant 0 : index
      %c0_18 = arith.constant 0 : index
      %30 = vector.load %arg4[%c0_17, %c0_18] : memref<8x128xf32, #tpu.memory_space<vmem>>, vector<8x128xf32>
      tpu.vector_store %arg4[%c0_17, %c0_18], %29 {strides = array<i32>} : memref<8x128xf32, #tpu.memory_space<vmem>>, vector<8x128xf32>,
    } else {
    }
    return
  }
  func.func @transform_0(%arg0: i32) -> (i32, i32) {
    %c0_i32 = arith.constant 0 : i32
    %c0_i32_0 = arith.constant 0 : i32
    return %arg0, %c0_i32 : i32, i32
  }
  func.func @transform_1(%arg0: i32) -> (i32, i32) {
    %c0_i32 = arith.constant 0 : i32
    %c0_i32_0 = arith.constant 0 : i32
    return %arg0, %c0_i32 : i32, i32
  }
  func.func @transform_2(%arg0: i32) -> (i32, i32) {
    %c0_i32 = arith.constant 0 : i32
    %c0_i32_0 = arith.constant 0 : i32
    return %arg0, %c0_i32 : i32, i32
  }
  func.func @transform_3(%arg0: i32) -> (i32, i32) {
    %c0_i32 = arith.constant 0 : i32
    %c0_i32_0 = arith.constant 0 : i32
    %c0_i32_1 = arith.constant 0 : i32
    return %c0_i32, %c0_i32_0 : i32, i32
  }
}

</mosaic_0001>

<bundles_post_ra>
// kernel: tpu_custom_call.1
= control target key start
LH: loop header
LB: loop body
LE: loop exit
PB: predicated region body
PF: predicated region fallthrough
CT: control target
= control target key end

     0   :  { %8 = vsyncpa [#allocation4], 0  ;;  %s278_s0 = inlined_call_operand.hbm [shape: f32[8,128], index: 0, kind: input, shape index: {}]   ;;  %s279_s1 = inlined_call_operand.hbm [shape: f32[8,128], index: 1, kind: input, shape index: {}]   ;;  %s280_s2 = inlined_call_operand.hbm [shape: f32[8,128], index: 2, kind: input, shape index: {}]   ;;  %s281_s3 = inlined_call_operand.hbm [shape: f32[8,128], index: 3, kind: output, shape index: {}]  }
   0x1   :  { %9 = vsyncpa [#allocation7], 0 }
   0x2   :  { %10 = vsyncpa [#allocation5], 0  ;;  %s206_s12 = smov [#allocation6]   ;;  %s207_s14 = smov [#allocation3]  }
   0x3   :  { %s27_s13 = sshll.u32 %s206_s12, 4  ;;  %s17_s15 = sshll.u32 %s207_s14, 4  ;;  %s28_s13 = int_to_ptr.vmem [resolvable:$true] %s27_s13  ;;  %s18_s15 = int_to_ptr.vmem [resolvable:$true] %s17_s15 }
   0x4   :  { %s112_s18 = scalar_lea.hbm %s279_s1, 128 }
   0x5   :  { %p113_p0 = scmp.ne.s32.totalorder %s279_s1, %s112_s18  ;;  %p116_p1 = scmp.lt.u32.totalorder %s112_s18, %s279_s1 }
   0x7   :  { %p118_p2 = pnand %p116_p1, %p113_p0 }
   0x9   :  { %121 = shalt.err (!%p118_p2)
}
   0xa   :  { %s122_s23 = scalar_lea.vmem %s28_s13, 128  ;;  %p127_p4 = scmp.lt.s32.totalorder %s28_s13, %s28_s13 }
   0xb   :  { %p123_p3 = scmp.ne.s32.totalorder %s28_s13, %s122_s23  ;;  %p128_p5 = scmp.lt.s32.totalorder %s122_s23, %s122_s23 }
   0xd   :  { %p129_p6 = por %p128_p5, %p127_p4 }
   0xf   :  { %p130_p7 = pnand %p129_p6, %p123_p3 }
  0x11   :  { %133 = shalt.err (!%p130_p7)
}
  0x12   :  { %30 = dma.hbm_to_vmem [thread:$0]  %s279_s1, 128, %s28_s13, [#allocation7]  }
  0x13   :  { %s134_s28 = scalar_lea.hbm %s278_s0, 128 }
  0x14   :  { %p135_p8 = scmp.ne.s32.totalorder %s278_s0, %s134_s28  ;;  %p138_p9 = scmp.lt.u32.totalorder %s134_s28, %s278_s0 }
  0x16   :  { %p140_p10 = pnand %p138_p9, %p135_p8 }
  0x18   :  { %143 = shalt.err (!%p140_p10)
}
  0x19   :  { %s144_s6 = scalar_lea.vmem %s18_s15, 128  ;;  %p149_p12 = scmp.lt.s32.totalorder %s18_s15, %s18_s15 }
  0x1a   :  { %p145_p11 = scmp.ne.s32.totalorder %s18_s15, %s144_s6  ;;  %p150_p13 = scmp.lt.s32.totalorder %s144_s6, %s144_s6 }
  0x1c   :  { %p151_p0 = por %p150_p13, %p149_p12 }
  0x1e   :  { %p152_p1 = pnand %p151_p0, %p145_p11 }
  0x20   :  { %155 = shalt.err (!%p152_p1)
}
  0x21   :  { %20 = dma.hbm_to_vmem [thread:$0]  %s278_s0, 128, %s18_s15, [#allocation4]  }
  0x22   :  { %s208_s8 = smov [#allocation8]   ;;  %s156_s12 = scalar_lea.hbm %s280_s2, 128 }
  0x23   :  { %s37_s9 = sshll.u32 %s208_s8, 4  ;;  %p157_p2 = scmp.ne.s32.totalorder %s280_s2, %s156_s12  ;;  %s38_s9 = int_to_ptr.vmem [resolvable:$true] %s37_s9 }
  0x24   :  { %p160_p3 = scmp.lt.u32.totalorder %s156_s12, %s280_s2 }
  0x26   :  { %p162_p4 = pnand %p160_p3, %p157_p2 }
  0x28   :  { %165 = shalt.err (!%p162_p4)
}
  0x29   :  { %s166_s18 = scalar_lea.vmem %s38_s9, 128  ;;  %p171_p6 = scmp.lt.s32.totalorder %s38_s9, %s38_s9 }
  0x2a   :  { %p167_p5 = scmp.ne.s32.totalorder %s38_s9, %s166_s18  ;;  %p172_p7 = scmp.lt.s32.totalorder %s166_s18, %s166_s18 }
  0x2c   :  { %p173_p8 = por %p172_p7, %p171_p6 }
  0x2e   :  { %p174_p9 = pnand %p173_p8, %p167_p5 }
  0x30   :  { %177 = shalt.err (!%p174_p9)
}
  0x31   :  { %40 = dma.hbm_to_vmem [thread:$0]  %s280_s2, 128, %s38_s9, [#allocation7]  }
  0x32   :  { %200 = dma.done.wait [#allocation4], 128  }
  0x33   :  { %201 = vsyncadd [#allocation4], 4294967168 }
  0x34   :  { %202 = dma.done.wait [#allocation7], 256  }
  0x35   :  { %203 = vsyncadd [#allocation7], 4294967040  ;;  %v57_v0 = vld [vmem:[#allocation8] sm:$0xff]  ;;  %v55_v2 = vld [vmem:[#allocation3] sm:$0xff]  ;;  %s209_s2 = smov [#allocation9]  }
  0x36   :  { %v58_v1 = vmax.f32 %v57_v0, 1e-06  ;;  %v56_v3 = vld [vmem:[#allocation6] sm:$0xff]  ;;  %s92_s19 = sshll.u32 %s209_s2, 4  ;;  %s93_s19 = int_to_ptr.vmem [resolvable:$true] %s92_s19 }
  0x37   :  { %v61_v4 = vsub.f32 %v55_v2, %v56_v3  ;;  %s178_s21 = scalar_lea.vmem %s93_s19, 128  ;;  %p183_p11 = scmp.lt.s32.totalorder %s93_s19, %s93_s19 }
  0x38   :  { %108 = vlog2.f32 %v58_v1  ;;  %p179_p10 = scmp.ne.s32.totalorder %s93_s19, %s178_s21  ;;  %p184_p12 = scmp.lt.s32.totalorder %s178_s21, %s178_s21 }
  0x39   :  { %110 = vrcp.f32 %v58_v1  ;;  %v62_v5 = vmul.f32 %v61_v4, %v61_v4 }
  0x3a   :  { %p185_p13 = por %p184_p12, %p183_p11 }
  0x3c   :  { %p186_p0 = pnand %p185_p13, %p179_p10 }
  0x42   :  { %v109_v6 = vpop.eup %108 }
  0x43   :  { %v111_v7 = vpop.eup %110  ;;  %v60_v8 = vmul.f32 0.6931472, %v109_v6 }
  0x44   :  { %v64_v9 = vmul.f32 %v111_v7, %v62_v5 }
  0x45   :  { %v65_v10 = vmul.f32 0.1, %v60_v8 }
  0x47   :  { %v66_v11 = vadd.f32 %v65_v10, %v64_v9 }
  0x49   :  { %75 = vadd.xlane.f32.xlu0 %v66_v11 }
  0xd6   :  { %v76_v12 = vpop.xlane.xlu0 %75 }
  0xd7   :  { %v77_v13 = vrot.slane %v76_v12, 4 }
  0xd9   :  { %v78_v14 = vadd.f32 %v77_v13, %v76_v12 }
  0xdb   :  { %v79_v15 = vrot.slane %v78_v14, 2 }
  0xdd   :  { %v80_v16 = vadd.f32 %v79_v15, %v78_v14 }
  0xdf   :  { %v81_v17 = vrot.slane %v80_v16, 1 }
  0xe1   :  { %v82_v18 = vadd.f32 %v81_v17, %v80_v16 }
  0xe3   :  { %102 = vpush %v82_v18 }
 0x114   :  { %s103_s20 = spop %102 }
 0x115   :  { %v84_v19 = vstv %s103_s20 }
 0x116   :  { %85 = vst [vmem:[#allocation9] sm:$0xff] %v84_v19 }
 0x117   :  { %189 = shalt.err (!%p186_p0)
}
 0x118   :  { %s190_s24 = scalar_lea.hbm %s281_s3, 128 }
 0x119   :  { %p191_p1 = scmp.ne.s32.totalorder %s281_s3, %s190_s24  ;;  %p194_p2 = scmp.lt.u32.totalorder %s190_s24, %s281_s3 }
 0x11b   :  { %p196_p3 = pnand %p194_p2, %p191_p1 }
 0x11d   :  { %199 = shalt.err (!%p196_p3)
}
 0x11e   :  { %95 = dma.vmem_to_hbm [thread:$0]  %s93_s19, 128, %s281_s3, [#allocation5]  }
 0x11f   :  { %204 = dma.done.wait [#allocation5], 128  }
 0x120   :  { %205 = vsyncadd [#allocation5], 4294967168 }
 0x121   :  { %99 = vsyncpa [#allocation4], 1 }
 0x122   :  { %100 = vsyncpa [#allocation7], 1 }
 0x123   :  { %101 = vsyncpa [#allocation5], 1 }

</bundles_post_ra>
